<compile_context>
chip_gen: v6e
topology: v6e:2x2x1
jax: 0.10.0
libtpu: 0.0.40
codegen_flags: <defaults>
</compile_context>

<pallas_src>
import functools

import jax
import jax.numpy as jnp
from jax import lax
from jax.experimental import pallas as pl
from jax.experimental.pallas import tpu as pltpu


def _zero_upsample_kernel(x_ref, o_ref, *, s, offset, out_w):
    # x_ref : (R, W)        block of flattened input rows
    # o_ref : (R, s*out_w)  each output row = s upsampled rows of one input row
    R, W = x_ref.shape

    # One-hot lane-scatter matrix generated on-chip: Sw[w, offset + w*s] = 1.
    w_iota = lax.broadcasted_iota(jnp.int32, (W, out_w), 0)
    ow_iota = lax.broadcasted_iota(jnp.int32, (W, out_w), 1)
    sw = (ow_iota == offset + w_iota * s).astype(jnp.float32)

    y = jnp.dot(x_ref[...].astype(jnp.float32), sw,
                preferred_element_type=jnp.float32)            # (R, out_w)

    head = offset * out_w                      # zero lanes before the y window
    tail = (s - offset - 1) * out_w            # zero lanes after the y window

    if head > 0:
        o_ref[:, pl.ds(0, head)] = jnp.zeros((R, head), jnp.float32)
    o_ref[:, pl.ds(head, out_w)] = y
    if tail > 0:
        o_ref[:, pl.ds(head + out_w, tail)] = jnp.zeros((R, tail), jnp.float32)


def _pick_block_rows(total_rows, in_w, out_w_block, vmem_limit_bytes):
    """Rows per grid step.

    Sized against ~65% of vmem_limit_bytes counting BOTH double-buffered f32
    blocks (input (r, in_w) and output (r, out_w_block)); capped so the grid
    has >= 4 steps when there are enough rows (>= 2 per TensorCore on v7x);
    kept a multiple of 8 sublanes and, when possible, an exact divisor of
    total_rows so there is no partial tail block.
    """
    budget = int(vmem_limit_bytes * 0.65)
    bytes_per_row = 2 * 4 * (in_w + out_w_block)        # double-buffered, f32
    r_cap = max(8, budget // bytes_per_row)

    if total_rows >= 4 * 8:                             # aim for >= 4 steps
        r_cap = min(r_cap, max(8, total_rows // 4))
    r_cap = min(r_cap, total_rows)

    if total_rows % 8 == 0:
        r_cap = max(8, (r_cap // 8) * 8)
        for r in range(r_cap, 7, -8):                   # largest divisor
            if total_rows % r == 0:
                return r
        return 8
    # total_rows not a multiple of 8: single (or partial-tail) block — Pallas
    # masks the out-of-range rows.
    return r_cap


def zero_upsample(x, scale_factor):
    B, I, C, H, W = x.shape
    s = int(scale_factor)
    offset = s // 2
    OH, OW = H * s, W * s
    R_total = B * I * C * H

    x2 = x.reshape(R_total, W)

    vmem_limit = 48 * 1024 * 1024
    r = _pick_block_rows(R_total, W, s * OW, vmem_limit)
    grid = (pl.cdiv(R_total, r),)

    kernel = functools.partial(
        _zero_upsample_kernel, s=s, offset=offset, out_w=OW)

    cost = pl.CostEstimate(
        flops=2 * R_total * W * OW,
        transcendentals=0,
        bytes_accessed=4 * (R_total * W + R_total * s * OW),
    )

    out2 = pl.pallas_call(
        kernel,
        out_shape=jax.ShapeDtypeStruct((R_total, s * OW), jnp.float32),
        grid_spec=pltpu.PrefetchScalarGridSpec(
            num_scalar_prefetch=0,
            grid=grid,
            in_specs=[pl.BlockSpec((r, W), lambda i: (i, 0))],       # row block
            out_specs=pl.BlockSpec((r, s * OW), lambda i: (i, 0)),   # lane-dense slab
        ),
        compiler_params=pltpu.CompilerParams(
            dimension_semantics=("parallel",),
            vmem_limit_bytes=vmem_limit,
        ),
        cost_estimate=cost,
    )(x2)

    # (R_total, s*OW) is bit-identical (row-major) to (B, I, C, OH, OW).
    return out2.reshape(B, I, C, OH, OW)


def zero_upsample_ref(x, scale_factor):
    # Pure-JAX reference mirroring the PyTorch semantics.
    B, I, C, H, W = x.shape
    s = int(scale_factor)
    offset = s // 2
    OH, OW = H * s, W * s
    out = jnp.zeros((B, I, C, OH, OW), jnp.float32)
    ih = offset + jnp.arange(H) * s
    iw = offset + jnp.arange(W) * s
    return out.at[:, :, :, ih[:, None], iw[None, :]].set(x.astype(jnp.float32))


if __name__ == "__main__":
    key = jax.random.PRNGKey(0)

    # Main test: offset = 2, OW = 128 → lane-dense output slab (512 lanes).
    B, I, C, H, W = 2, 2, 4, 32, 32
    scale_factor = 4
    x = jax.random.normal(key, (B, I, C, H, W), dtype=jnp.float32)

    y = zero_upsample(x, scale_factor)
    y = jax.block_until_ready(y)
    y_ref = zero_upsample_ref(x, scale_factor)
    assert y.shape == (B, I, C, H * scale_factor, W * scale_factor)
    assert y.dtype == jnp.float32
    assert jnp.allclose(y, y_ref, atol=1e-6), "mismatch vs reference (s=4)"

    # Secondary test: small odd shapes, s=2 (head window only, no tail).
    x2 = jax.random.normal(jax.random.PRNGKey(1), (1, 2, 3, 16, 16),
                           dtype=jnp.float32)
    y2 = jax.block_until_ready(zero_upsample(x2, 2))
    assert jnp.allclose(y2, zero_upsample_ref(x2, 2), atol=1e-6), \
        "mismatch vs reference (s=2)"

    print("KERNEL_OK")
</pallas_src>

<mosaic_0001>
module attributes {stable_mosaic.version = 11 : i64} {
  func.func @_zero_upsample_kernel(%arg0: i32, %arg1: memref<128x32xf32, #tpu.memory_space<vmem>>, %arg2: memref<128x512xf32, #tpu.memory_space<vmem>>) attributes {dimension_semantics = [#tpu.dimension_semantics<parallel>], iteration_bounds = array<i64: 4>, scalar_prefetch = 0 : i64, scratch_operands = 0 : i64, tpu.core_type = #tpu.core_type<tc>, window_params = [{transform_indices = @transform_0, window_bounds = array<i64: 128, 32>}, {transform_indices = @transform_1, window_bounds = array<i64: 128, 512>}]} {
    %0 = tpu.iota {dimensions = array<i32: 0>} : vector<32x128xi32>
    %1 = tpu.iota {dimensions = array<i32: 1>} : vector<32x128xi32>
    %c4_i32 = arith.constant 4 : i32
    %2 = vector.broadcast %c4_i32 : i32 to vector<32x128xi32>
    %3 = arith.muli %0, %2 : vector<32x128xi32>
    %c2_i32 = arith.constant 2 : i32
    %4 = vector.broadcast %c2_i32 : i32 to vector<32x128xi32>
    %5 = arith.addi %4, %3 : vector<32x128xi32>
    %6 = arith.cmpi eq, %1, %5 : vector<32x128xi32>
    %7 = arith.extui %6 : vector<32x128xi1> to vector<32x128xi32>
    %8 = arith.sitofp %7 : vector<32x128xi32> to vector<32x128xf32>
    %c0 = arith.constant 0 : index
    %c0_0 = arith.constant 0 : index
    %9 = vector.load %arg1[%c0, %c0_0] : memref<128x32xf32, #tpu.memory_space<vmem>>, vector<128x32xf32>
    %cst = arith.constant dense<0.000000e+00> : vector<128x128xf32>
    %10 = tpu.matmul %9, %8, %cst {dimension_numbers = #tpu.dot_dimension_numbers<[1], [0], [0], [1], [0, 0, 1, 1], [], []>} : vector<128x32xf32>, vector<32x128xf32>, vector<128x128xf32> -> vector<128x128xf32>
    %cst_1 = arith.constant 0.000000e+00 : f32
    %11 = vector.broadcast %cst_1 : f32 to vector<128x256xf32>
    %c0_2 = arith.constant 0 : index
    %c0_3 = arith.constant 0 : index
    %12 = vector.load %arg2[%c0_2, %c0_3] : memref<128x512xf32, #tpu.memory_space<vmem>>, vector<128x256xf32>
    tpu.vector_store %arg2[%c0_2, %c0_3], %11 {strides = array<i32>} : memref<128x512xf32, #tpu.memory_space<vmem>>, vector<128x256xf32>,
    %c0_4 = arith.constant 0 : index
    %c256 = arith.constant 256 : index
    %13 = vector.load %arg2[%c0_4, %c256] : memref<128x512xf32, #tpu.memory_space<vmem>>, vector<128x128xf32>
    tpu.vector_store %arg2[%c0_4, %c256], %10 {strides = array<i32>} : memref<128x512xf32, #tpu.memory_space<vmem>>, vector<128x128xf32>,
    %cst_5 = arith.constant 0.000000e+00 : f32
    %14 = vector.broadcast %cst_5 : f32 to vector<128x128xf32>
    %c0_6 = arith.constant 0 : index
    %c384 = arith.constant 384 : index
    %15 = vector.load %arg2[%c0_6, %c384] : memref<128x512xf32, #tpu.memory_space<vmem>>, vector<128x128xf32>
    tpu.vector_store %arg2[%c0_6, %c384], %14 {strides = array<i32>} : memref<128x512xf32, #tpu.memory_space<vmem>>, vector<128x128xf32>,
    return
  }
  func.func @transform_0(%arg0: i32) -> (i32, i32) {
    %c0_i32 = arith.constant 0 : i32
    %c0_i32_0 = arith.constant 0 : i32
    return %arg0, %c0_i32 : i32, i32
  }
  func.func @transform_1(%arg0: i32) -> (i32, i32) {
    %c0_i32 = arith.constant 0 : i32
    %c0_i32_0 = arith.constant 0 : i32
    return %arg0, %c0_i32 : i32, i32
  }
}

</mosaic_0001>

<bundles_post_ra>
// kernel: tpu_custom_call.1
= control target key start
LH: loop header
LB: loop body
LE: loop exit
PB: predicated region body
PF: predicated region fallthrough
CT: control target
= control target key end

     0   :  { %6 = vsyncpa [#allocation3], 0  ;;  %s921_s0 = inlined_call_operand.vmem [shape: f32[512,32], index: 0, kind: input, shape index: {}]   ;;  %s922_s1 = inlined_call_operand.hbm [shape: f32[512,512], index: 1, kind: output, shape index: {}]  }
   0x1   :  { %8 = vsyncpa [#allocation3 + $0x1], 0  ;;  %s715_s6 = smov 0   ;;  %s717_s7 = smov 0  }
   0x2   :  { %s719_s8 = smov 0   ;;  %s721_s9 = smov 0  }
   0x3 LB: > { %s736_s10 = sadd.s32 4294967295, %s698_s9   ;;  %s496_s11 = sadd.s32 4294967294, %s698_s9   ;;  %s698_s9 = sphi %s721_s9, %s928_s9   ;;  %s694_s8 = sphi %s719_s8, %s927_s8   ;;  %s690_s7 = sphi %s717_s7, %s926_s7   ;;  %s686_s6 = sphi %s715_s6, %s925_s6  }
   0x4   : > { %s740_s12 = sadd.s32 1, %s698_s9   ;;  %s47_s13 = sadd.s32 1, %s694_s8 }
   0x5   : > { %s44_s14 = ssub.s32 %s698_s9, %s740_s12  ;;  %p57_p0 = scmp.ne.s32.totalorder %s694_s8, %s690_s7 }
   0x6   : > { %p45_p1 = scmp.eq.s32.totalorder %s44_s14, 0  ;;  %p58_p2 = scmp.eq.s32.totalorder %s736_s10, 3 }
   0x7   : > { %p63_p3 = scmp.ne.s32.totalorder %s690_s7, %s686_s6  ;;  %p64_p4 = scmp.eq.s32.totalorder %s496_s11, 3 }
   0x8   : > { %s751_s15 = scalar_select %p45_p1, %s694_s8, %s47_s13  }
   0x9   : > { %p753_p5 = por %p58_p2, %p57_p0  ;;  %p757_p6 = por %p64_p4, %p63_p3 }
   0xa   : > { %p499_p7 = scmp.ge.s32.totalorder %s698_s9, 1  ;;  %p91_p8 = scmp.lt.s32.totalorder %s698_s9, 5 }
   0xc   : > { %p92_p9 = pnand %p499_p7, %p91_p8 }
   0xd   : > { %s501_s18 = sshll.u32 (!%p92_p9), %s736_s10, 4  ;;  %s108_s23 = sand.u32 (!%p92_p9), 1, %s690_s7  }
   0xe   : > { %95 = sbr.rel (%p92_p9) target bundleno = 259 (0x103), region = 24  ;;  %p112_p10 = scmp.lt.s32.totalorder (!%p92_p9), %s501_s18, 63 }
   0xf   : > { %s500_s24 = sshll.u32 (!%p92_p9), %s108_s23, 9  ;;  %s534_s26 = sshll.u32 (!%p92_p9), %s736_s10, 13 }
  0x10   : > { %s804_s25 = scalar_lea.vmem (!%p92_p9), [#allocation2], %s500_s24  ;;  %s871_s30 = scalar_lea.hbm (!%p92_p9), %s922_s1, %s534_s26 }
  0x11   : > { %s434_s27 = sshll.u32 (!%p92_p9), %s804_s25, 4  ;;  %s881_s2 = scalar_lea.sflag (!%p92_p9), [#allocation3], %s108_s23  ;;  %s873_s27 = int_to_ptr.vmem [resolvable:$true] %s434_s27 }
  0x12   : > { %s638_s3 = scalar_lea.vmem (!%p92_p9), %s873_s27, 8192  ;;  %s702_s4 = smov (!%p92_p9), [#allocation2]  }
  0x13   : > { %v118_v0 = vlaneseq  ;;  %s930_s18 = smov (!%p112_p10, %s501_s18), 63  ;;  %vm161_vm0 = vcmask 261120   ;;  %v700_v16 = vmov 1.0   ;;  %v701_v31 = vmov 0.0   ;;  %p639_p11 = scmp.ne.s32.totalorder %s873_s27, %s638_s3 }
  0x14   : > { %s502_s19 = sshll.u32 %s930_s18, 3  ;;  %355 = vst [vmem:[%s804_s25] sm:$0xff] %v701_v31  ;;  %356 = vst [vmem:[%s804_s25 + $0x8] sm:$0xff] %v701_v31  ;;  %s642_s5 = sshll.u32 %s702_s4, 4  ;;  %s643_s5 = int_to_ptr.vmem [resolvable:$false] %s642_s5 }
  0x15   : > { %v119_v1 = vshrl.u32 %v118_v0, 7  ;;  %v124_v6 = vand.u32 127, %v118_v0  ;;  %s767_s22 = scalar_lea.vmem %s921_s0, %s502_s19  ;;  %357 = vst [vmem:[%s804_s25 + $0x20] sm:$0xff] %v701_v31  ;;  %358 = vst [vmem:[%s804_s25 + $0x28] sm:$0xff] %v701_v31  ;;  %p640_p12 = pnand %p639_p11, %p753_p5 }
  0x16   : > { %v145_v10 = vld [vmem:[%s767_s22] sm:$0xff]  ;;  %v146_v17 = vld [vmem:[%s767_s22 + $0x8] sm:$0xff]  ;;  %v147_v19 = vld [vmem:[%s767_s22 + $0x10] sm:$0xff]  ;;  %359 = vst [vmem:[%s804_s25 + $0x40] sm:$0xff] %v701_v31  ;;  %s644_s10 = scalar_lea.vmem %s643_s5, 16384  ;;  %p645_p0 = scmp.lt.s32.totalorder %s873_s27, %s643_s5 }
  0x17   : > { %v122_v2 = vadd.s32 24, %v119_v1  ;;  %v121_v3 = vadd.s32 16, %v119_v1  ;;  %v120_v4 = vadd.s32 8, %v119_v1  ;;  %v125_v5 = vmul.u32 4, %v119_v1  ;;  %v153_v11 = vld [vmem:[%s767_s22 + $0x40] sm:$0xff]  ;;  %563 = vmatprep.mubr.msk.f32.mxu0 %vm161_vm0, %v145_v10  ;;  %v154_v18 = vld [vmem:[%s767_s22 + $0x48] sm:$0xff]  ;;  %p641_p13 = pneg %p640_p12  ;;  %p646_p1 = scmp.lt.s32.totalorder %s644_s10, %s638_s3 }
  0x18   : > { %575 = vmatprep.mubr.msk.f32.mxu1 %vm161_vm0, %v153_v11  ;;  %v155_v20 = vld [vmem:[%s767_s22 + $0x50] sm:$0xff]  ;;  %v148_v21 = vld [vmem:[%s767_s22 + $0x18] sm:$0xff]  ;;  %v149_v23 = vld [vmem:[%s767_s22 + $0x20] sm:$0xff]  ;;  %360 = vst [vmem:[%s804_s25 + $0x48] sm:$0xff] %v701_v31 }
  0x19   : > { %v128_v7 = vmul.u32 4, %v122_v2  ;;  %v127_v8 = vmul.u32 4, %v121_v3  ;;  %v129_v15 = vadd.s32 2, %v125_v5  ;;  %v156_v22 = vld [vmem:[%s767_s22 + $0x58] sm:$0xff]  ;;  %v157_v24 = vld [vmem:[%s767_s22 + $0x60] sm:$0xff]  ;;  %v150_v25 = vld [vmem:[%s767_s22 + $0x28] sm:$0xff]  ;;  %p647_p2 = por %p646_p1, %p645_p0 }
  0x1a   : > { %v126_v9 = vmul.u32 4, %v120_v4  ;;  %v158_v26 = vld [vmem:[%s767_s22 + $0x68] sm:$0xff]  ;;  %v151_v27 = vld [vmem:[%s767_s22 + $0x30] sm:$0xff]  ;;  %v152_v29 = vld [vmem:[%s767_s22 + $0x38] sm:$0xff]  ;;  %361 = vst [vmem:[%s804_s25 + $0x60] sm:$0xff] %v701_v31 }
  0x1b   : > { %v132_v12 = vadd.s32 2, %v128_v7  ;;  %v131_v13 = vadd.s32 2, %v127_v8  ;;  %vm133_vm4 = vcmp.eq.s32.totalorder %v124_v6, %v129_v15  ;;  %v159_v28 = vld [vmem:[%s767_s22 + $0x70] sm:$0xff]  ;;  %v160_v30 = vld [vmem:[%s767_s22 + $0x78] sm:$0xff]  ;;  %362 = vst [vmem:[%s804_s25 + $0x68] sm:$0xff] %v701_v31  ;;  %363 = vst [vmem:[%s804_s25 + $0x80] sm:$0xff] %v701_v31  ;;  %p648_p3 = pnand %p647_p2, %p641_p13 }
  0x1c   : > { %v130_v14 = vadd.s32 2, %v126_v9  ;;  %364 = vst [vmem:[%s804_s25 + $0x88] sm:$0xff] %v701_v31  ;;  %365 = vst [vmem:[%s804_s25 + $0xa0] sm:$0xff] %v701_v31 }
  0x1d   : > { %vm136_vm1 = vcmp.eq.s32.totalorder %v124_v6, %v132_v12  ;;  %vm135_vm2 = vcmp.eq.s32.totalorder %v124_v6, %v131_v13  ;;  %366 = vst [vmem:[%s804_s25 + $0xa8] sm:$0xff] %v701_v31  ;;  %367 = vst [vmem:[%s804_s25 + $0xc0] sm:$0xff] %v701_v31 }
  0x1e   : > { %555 = vmatprep.subr.msk.mxu0 %vm136_vm1, %v700_v16  ;;  %587 = vmatprep.subr.msk.mxu1 %vm136_vm1, %v700_v16  ;;  %vm134_vm3 = vcmp.eq.s32.totalorder %v124_v6, %v130_v14  ;;  %368 = vst [vmem:[%s804_s25 + $0xc8] sm:$0xff] %v701_v31  ;;  %369 = vst [vmem:[%s804_s25 + $0xe0] sm:$0xff] %v701_v31 }
  0x1f   : > { %556 = vmatpush3.msk.msra.mxu0 %vm136_vm1, %v700_v16  ;;  %591 = vmatpush3.msk.msra.mxu1 %vm136_vm1, %v700_v16  ;;  %370 = vst [vmem:[%s804_s25 + $0xe8] sm:$0xff] %v701_v31  ;;  %371 = vst [vmem:[%s804_s25 + $0x100] sm:$0xff] %v701_v31 }
  0x20   : > { %557 = vmatprep.subr.msk.mxu0 %vm135_vm2, %v700_v16  ;;  %588 = vmatprep.subr.msk.mxu1 %vm135_vm2, %v700_v16  ;;  %372 = vst [vmem:[%s804_s25 + $0x108] sm:$0xff] %v701_v31  ;;  %373 = vst [vmem:[%s804_s25 + $0x120] sm:$0xff] %v701_v31 }
  0x21   : > { %558 = vmatpush3.msk.msra.mxu0 %vm135_vm2, %v700_v16  ;;  %592 = vmatpush3.msk.msra.mxu1 %vm135_vm2, %v700_v16  ;;  %374 = vst [vmem:[%s804_s25 + $0x128] sm:$0xff] %v701_v31  ;;  %375 = vst [vmem:[%s804_s25 + $0x140] sm:$0xff] %v701_v31 }
  0x22   : > { %559 = vmatprep.subr.msk.mxu0 %vm134_vm3, %v700_v16  ;;  %589 = vmatprep.subr.msk.mxu1 %vm134_vm3, %v700_v16  ;;  %376 = vst [vmem:[%s804_s25 + $0x148] sm:$0xff] %v701_v31  ;;  %377 = vst [vmem:[%s804_s25 + $0x160] sm:$0xff] %v701_v31 }
  0x23   : > { %560 = vmatpush3.msk.msra.mxu0 %vm134_vm3, %v700_v16  ;;  %593 = vmatpush3.msk.msra.mxu1 %vm134_vm3, %v700_v16  ;;  %378 = vst [vmem:[%s804_s25 + $0x168] sm:$0xff] %v701_v31  ;;  %379 = vst [vmem:[%s804_s25 + $0x180] sm:$0xff] %v701_v31 }
  0x24   : > { %561 = vmatprep.subr.msk.mxu0 %vm133_vm4, %v700_v16  ;;  %590 = vmatprep.subr.msk.mxu1 %vm133_vm4, %v700_v16  ;;  %380 = vst [vmem:[%s804_s25 + $0x188] sm:$0xff] %v701_v31  ;;  %381 = vst [vmem:[%s804_s25 + $0x1a0] sm:$0xff] %v701_v31 }
  0x25   : > { %562 = vmatpush3.msk.msra.mxu0 %vm133_vm4, %v700_v16  ;;  %594 = vmatpush3.msk.msra.mxu1 %vm133_vm4, %v700_v16  ;;  %382 = vst [vmem:[%s804_s25 + $0x1a8] sm:$0xff] %v701_v31  ;;  %383 = vst [vmem:[%s804_s25 + $0x1c0] sm:$0xff] %v701_v31 }
  0x26   : > { %564 = vmatmul.mubr.msk.f32.vlgmr.msra.gmra.mxu0 %vm161_vm0, %v146_v17  ;;  %576 = vmatmul.mubr.msk.f32.vlgmr.msra.gmra.mxu1 %vm161_vm0, %v154_v18  ;;  %384 = vst [vmem:[%s804_s25 + $0x1c8] sm:$0xff] %v701_v31  ;;  %385 = vst [vmem:[%s804_s25 + $0x1e0] sm:$0xff] %v701_v31 }
  0x27   : > { %566 = vmatprep.mubr.msk.f32.mxu0 %vm161_vm0, %v147_v19  ;;  %578 = vmatprep.mubr.msk.f32.mxu1 %vm161_vm0, %v155_v20  ;;  %386 = vst [vmem:[%s804_s25 + $0x1e8] sm:$0xff] %v701_v31  ;;  %403 = vst [vmem:[%s804_s25 + $0x18] sm:$0xff] %v701_v31 }
  0x28   : > { %404 = vst [vmem:[%s804_s25 + $0x38] sm:$0xff] %v701_v31  ;;  %405 = vst [vmem:[%s804_s25 + $0x58] sm:$0xff] %v701_v31 }
  0x29   : > { %406 = vst [vmem:[%s804_s25 + $0x78] sm:$0xff] %v701_v31  ;;  %407 = vst [vmem:[%s804_s25 + $0x98] sm:$0xff] %v701_v31 }
  0x2a   : > { %567 = vmatmul.mubr.msk.f32.gmra.mxu0 %vm161_vm0, %v148_v21  ;;  %579 = vmatmul.mubr.msk.f32.gmra.mxu1 %vm161_vm0, %v156_v22  ;;  %408 = vst [vmem:[%s804_s25 + $0xb8] sm:$0xff] %v701_v31  ;;  %409 = vst [vmem:[%s804_s25 + $0xd8] sm:$0xff] %v701_v31 }
  0x2b   : > { %569 = vmatprep.mubr.msk.f32.mxu0 %vm161_vm0, %v149_v23  ;;  %581 = vmatprep.mubr.msk.f32.mxu1 %vm161_vm0, %v157_v24  ;;  %410 = vst [vmem:[%s804_s25 + $0xf8] sm:$0xff] %v701_v31  ;;  %411 = vst [vmem:[%s804_s25 + $0x118] sm:$0xff] %v701_v31 }
  0x2c   : > { %412 = vst [vmem:[%s804_s25 + $0x138] sm:$0xff] %v701_v31  ;;  %413 = vst [vmem:[%s804_s25 + $0x158] sm:$0xff] %v701_v31 }
  0x2d   : > { %414 = vst [vmem:[%s804_s25 + $0x178] sm:$0xff] %v701_v31  ;;  %415 = vst [vmem:[%s804_s25 + $0x198] sm:$0xff] %v701_v31 }
  0x2e   : > { %570 = vmatmul.mubr.msk.f32.gmra.mxu0 %vm161_vm0, %v150_v25  ;;  %582 = vmatmul.mubr.msk.f32.gmra.mxu1 %vm161_vm0, %v158_v26  ;;  %416 = vst [vmem:[%s804_s25 + $0x1b8] sm:$0xff] %v701_v31  ;;  %417 = vst [vmem:[%s804_s25 + $0x1d8] sm:$0xff] %v701_v31 }
  0x2f   : > { %572 = vmatprep.mubr.msk.f32.mxu0 %vm161_vm0, %v151_v27  ;;  %584 = vmatprep.mubr.msk.f32.mxu1 %vm161_vm0, %v159_v28  ;;  %418 = vst [vmem:[%s804_s25 + $0x1f8] sm:$0xff] %v701_v31 }
  0x32   : > { %573 = vmatmul.mubr.msk.f32.gmra.mxu0 %vm161_vm0, %v152_v29  ;;  %585 = vmatmul.mubr.msk.f32.gmra.mxu1 %vm161_vm0, %v160_v30 }
  0xe6   : > { %v565_v32 = vpop.f32.mrf.mxu0  ;;  %v577_v33 = vpop.f32.mrf.mxu1 }
  0xe7   : > { %388 = vst [vmem:[%s804_s25 + $0x30] sm:$0xff] %v565_v32  ;;  %396 = vst [vmem:[%s804_s25 + $0x130] sm:$0xff] %v577_v33 }
  0xe8   : > { %v276_v34 = vpop.f32.mrf.mxu0  ;;  %v316_v35 = vpop.f32.mrf.mxu1 }
  0xe9   : > { %387 = vst [vmem:[%s804_s25 + $0x10] sm:$0xff] %v276_v34  ;;  %395 = vst [vmem:[%s804_s25 + $0x110] sm:$0xff] %v316_v35 }
  0xea   : > { %v568_v36 = vpop.f32.mrf.mxu0  ;;  %v580_v37 = vpop.f32.mrf.mxu1 }
  0xeb   : > { %390 = vst [vmem:[%s804_s25 + $0x70] sm:$0xff] %v568_v36  ;;  %398 = vst [vmem:[%s804_s25 + $0x170] sm:$0xff] %v580_v37 }
  0xec   : > { %v286_v38 = vpop.f32.mrf.mxu0  ;;  %v326_v39 = vpop.f32.mrf.mxu1 }
  0xed   : > { %389 = vst [vmem:[%s804_s25 + $0x50] sm:$0xff] %v286_v38  ;;  %397 = vst [vmem:[%s804_s25 + $0x150] sm:$0xff] %v326_v39 }
  0xee   : > { %v571_v40 = vpop.f32.mrf.mxu0  ;;  %v583_v41 = vpop.f32.mrf.mxu1 }
  0xef   : > { %392 = vst [vmem:[%s804_s25 + $0xb0] sm:$0xff] %v571_v40  ;;  %400 = vst [vmem:[%s804_s25 + $0x1b0] sm:$0xff] %v583_v41 }
  0xf0   : > { %v296_v42 = vpop.f32.mrf.mxu0  ;;  %v336_v43 = vpop.f32.mrf.mxu1 }
  0xf1   : > { %391 = vst [vmem:[%s804_s25 + $0x90] sm:$0xff] %v296_v42  ;;  %399 = vst [vmem:[%s804_s25 + $0x190] sm:$0xff] %v336_v43 }
  0xf2   : > { %v574_v44 = vpop.f32.mrf.mxu0  ;;  %v586_v45 = vpop.f32.mrf.mxu1 }
  0xf3   : > { %394 = vst [vmem:[%s804_s25 + $0xf0] sm:$0xff] %v574_v44  ;;  %402 = vst [vmem:[%s804_s25 + $0x1f0] sm:$0xff] %v586_v45 }
  0xf4   : > { %v306_v46 = vpop.f32.mrf.mxu0  ;;  %v346_v47 = vpop.f32.mrf.mxu1 }
  0xf5   : > { %393 = vst [vmem:[%s804_s25 + $0xd0] sm:$0xff] %v306_v46  ;;  %401 = vst [vmem:[%s804_s25 + $0x1d0] sm:$0xff] %v346_v47 }
  0xf6   : > { %651 = shalt.err (!%p648_p3)
}
  0xf7   : > { %s652_s11 = scalar_lea.hbm %s871_s30, 8192  ;;  %s656_s18 = scalar_lea.hbm %s922_s1, 32768 }
  0xf8   : > { %p653_p4 = scmp.ne.s32.totalorder %s871_s30, %s652_s11  ;;  %p657_p9 = scmp.lt.s32.totalorder %s871_s30, %s922_s1 }
  0xf9   : > { %p658_p10 = scmp.lt.s32.totalorder %s656_s18, %s652_s11 }
  0xfa   : > { %p654_p7 = pnand %p653_p4, %p753_p5 }
  0xfb   : > { %p659_p11 = por %p658_p10, %p657_p9 }
  0xfc   : > { %p655_p8 = pneg %p654_p7 }
  0xfe   : > { %p660_p12 = pnand %p659_p11, %p655_p8 }
 0x100   : > { %663 = shalt.err (!%p660_p12)
}
 0x101   : > { %s703_s21 = smov 512   ;;  %s704_s22 = smov 32  }
 0x102   : > { %595 = dma.vmem_to_hbm [thread:$0]  (%p753_p5), %s873_s27, 8192, %s871_s30, %s881_s2, %s703_s21, %s703_s21, %s704_s22  }
 0x103 PF: > { %p601_p13 = scmp.ge.s32.totalorder %s698_s9, 2  ;;  %s449_s23 = sand.u32 1, %s686_s6  }
 0x104   : > { %s450_s24 = scalar_lea.sflag [#allocation3], %s449_s23 }
 0x105   : > { %p598_p0 = pnand %p601_p13, %p757_p6 }
 0x107   : > { %p599_p1 = pneg %p598_p0 }
 0x109   : > { %681 = dma.done.wait (%p599_p1), %s450_s24, 8192  }
 0x10a   : > { %683 = vsyncadd (%p599_p1), %s450_s24, 4294959104  ;;  %p11_p2 = scmp.ge.s32.totalorder %s740_s12, 6   ;;  %s925_s6 = smov %s690_s7 }
 0x10b   : > { %s926_s7 = smov %s694_s8  ;;  %s927_s8 = smov %s751_s15 }
 0x10c   : > { %s928_s9 = smov %s740_s12  ;;  %13 = sbr.rel (!%p11_p2) target bundleno = 3 (0x3), region = 59 }
 0x111   :  { %455 = vsyncpa [#allocation3], 1 }
 0x112   :  { %457 = vsyncpa [#allocation3 + $0x1], 1 }

</bundles_post_ra>
